<compile_context>
chip_gen: v6e
topology: v6e:2x2x1
jax: 0.10.0
libtpu: 0.0.40
codegen_flags: <defaults>
</compile_context>

<pallas_src>
import functools

import jax
import jax.numpy as jnp
from jax.experimental import pallas as pl
from jax.experimental.pallas import tpu as pltpu


_LEAKY_SLOPE = 0.3
_LANE = 128


def _leaky_relu(v, slope=_LEAKY_SLOPE):
    return jnp.where(v >= 0, v, slope * v)


def _round_up(n, m):
    return ((n + m - 1) // m) * m


def _cvae_kernel(xin_ref, w_in_ref, w_hid_ref, b_ref, out_ref, *, din, dc, dl, h):
    """Feature-major fused CVAE forward for one batch block.

    xin_ref  : (din+dc+dl, BB) bf16   rows = [x^T ; y^T ; eps^T]
    w_in_ref : (h, din+2*dc+dl) bf16  cols = [W_enc1 | W_dec1_y | W_dec1_z]
    w_hid_ref: (2*dl+h+din, h)  bf16  rows = [W_mu;W_var ; W_dec2 ; W_dec3]
    b_ref    : (3*h+2*dl+din,1) f32   rows = [b_enc1 ; b_mu;b_var ; b_dec1 ; b_dec2 ; b_dec3]
    out_ref  : (din+2*dl, BB)   f32   rows = [generated_sig ; z_mu ; z_var]
    """
    f32 = jnp.float32
    bf16 = jnp.bfloat16

    # Packed input slab: cat(x, y)^T is a contiguous sublane slice -> no concat.
    xy = xin_ref[0:din + dc, :]                          # (din+dc, BB) bf16
    y_t = xin_ref[din:din + dc, :]                       # (dc, BB)     bf16
    eps = xin_ref[din + dc:din + dc + dl, :].astype(f32)  # (dl, BB)     f32

    w_enc1 = w_in_ref[:, 0:din + dc]                     # (h, din+dc)
    w_dec1_y = w_in_ref[:, din + dc:din + 2 * dc]        # (h, dc)
    w_dec1_z = w_in_ref[:, din + 2 * dc:]                # (h, dl)
    w_muvar = w_hid_ref[0:2 * dl, :]                     # (2*dl, h)
    w_dec2 = w_hid_ref[2 * dl:2 * dl + h, :]             # (h, h)
    w_dec3 = w_hid_ref[2 * dl + h:, :]                   # (din, h)
    b_enc1 = b_ref[0:h]
    b_muvar = b_ref[h:h + 2 * dl]
    b_dec1 = b_ref[h + 2 * dl:2 * h + 2 * dl]
    b_dec2 = b_ref[2 * h + 2 * dl:3 * h + 2 * dl]
    b_dec3 = b_ref[3 * h + 2 * dl:]

    # ---- Encoder ----
    hidden = _leaky_relu(
        jnp.dot(w_enc1, xy, preferred_element_type=f32) + b_enc1)
    # Fused [mu | var] head: one (2*dl, h) matmul, sublane-packed result.
    muvar = _leaky_relu(
        jnp.dot(w_muvar, hidden.astype(bf16), preferred_element_type=f32) + b_muvar)
    z_mu = muvar[0:dl, :]
    z_var = muvar[dl:, :]

    # ---- Reparameterization: x_sample = eps * exp(z_var / 2) + z_mu ----
    x_sample = eps * jnp.exp(z_var * 0.5) + z_mu

    # ---- Decoder: cat(x_sample, y) via split weights ----
    h1 = _leaky_relu(
        jnp.dot(w_dec1_z, x_sample.astype(bf16), preferred_element_type=f32)
        + jnp.dot(w_dec1_y, y_t, preferred_element_type=f32)
        + b_dec1)
    h2 = _leaky_relu(
        jnp.dot(w_dec2, h1.astype(bf16), preferred_element_type=f32) + b_dec2)
    logits = jnp.dot(w_dec3, h2.astype(bf16), preferred_element_type=f32) + b_dec3

    # Lane-dense (BB = multiple of 128) unmasked stores.
    out_ref[0:din, :] = jax.nn.sigmoid(logits)   # generated_sig (outputpositive=True)
    out_ref[din:, :] = muvar                     # packed [z_mu ; z_var]


@functools.partial(jax.jit, static_argnames=("block_b",))
def cvae_forward(x, y, eps, params, *, block_b=2048):
    """Pallas CVAE forward. Returns (generated_sig, z_mu, z_var), all f32 (B, .)."""
    B, din = x.shape
    dc = y.shape[1]
    dl = eps.shape[1]
    w_in, w_hid, b = params["w_in"], params["w_hid"], params["b"]
    h = w_in.shape[0]

    f_in = din + dc + dl
    f_out = din + 2 * dl

    # Balanced, lane-aligned batch blocks.  Force >=2 blocks at large B so the
    # "parallel" grid axis actually feeds both TensorCores on v7x.
    nblocks = -(-B // block_b)
    if nblocks == 1 and B >= 1024:
        nblocks = 2
    bb = _round_up(-(-B // nblocks), _LANE)
    bp = nblocks * bb

    # Packed, feature-major, bf16 input slab: rows = [x^T ; y^T ; eps^T].
    xin = jnp.concatenate([x, y, eps], axis=1).astype(jnp.bfloat16).T
    if bp != B:
        xin = jnp.pad(xin, ((0, 0), (0, bp - B)))

    act_in_spec = pl.BlockSpec((f_in, bb), lambda i: (0, i))
    out_spec = pl.BlockSpec((f_out, bb), lambda i: (0, i))

    def resident(arr):
        # Constant block index -> DMA'd once, stays VMEM-resident across steps.
        return pl.BlockSpec(arr.shape, lambda i: (0, 0))

    # VMEM budget from *padded* tile sizes (bf16 sublane tile 16, f32 tile 8,
    # lanes pad to 128), double buffers for streaming slabs + resident weights
    # + f32 intermediates, capped at 48 MiB (headroom on v7x's 64 MiB).
    in_tile = _round_up(f_in, 16) * bb * 2
    out_tile = _round_up(f_out, 8) * bb * 4
    w_bytes = (_round_up(w_in.shape[0], 16) * _round_up(w_in.shape[1], _LANE) * 2
               + _round_up(w_hid.shape[0], 16) * _round_up(w_hid.shape[1], _LANE) * 2
               + _round_up(b.shape[0], 8) * _LANE * 4)
    interm = 8 * _round_up(h, 8) * bb * 4
    vmem_limit = int(min(48 * 1024 * 1024,
                         max(2 * (in_tile + out_tile) + 2 * w_bytes + interm
                             + (4 << 20), 8 << 20)))

    out = pl.pallas_call(
        functools.partial(_cvae_kernel, din=din, dc=dc, dl=dl, h=h),
        out_shape=jax.ShapeDtypeStruct((f_out, bp), jnp.float32),
        grid=(nblocks,),
        in_specs=[act_in_spec, resident(w_in), resident(w_hid), resident(b)],
        out_specs=out_spec,
        compiler_params=pltpu.CompilerParams(
            dimension_semantics=("parallel",),
            vmem_limit_bytes=vmem_limit,
        ),
    )(xin, w_in, w_hid, b)

    gen = out[:din, :B].T
    z_mu = out[din:din + dl, :B].T
    z_var = out[din + dl:, :B].T
    return gen, z_mu, z_var


def init_params(key, input_dim, hidden_dim, latent_dim, condition_dim):
    """nn.Linear-style init (U(+-1/sqrt(fan_in))), weights in (out, in) layout
    and packed into 3 arrays at init time (zero runtime cost). Matmul weights
    are stored bf16; biases stay f32."""
    def linear(k, fan_in, fan_out):
        kw, kb = jax.random.split(k)
        bound = 1.0 / jnp.sqrt(fan_in)
        w = jax.random.uniform(kw, (fan_out, fan_in), jnp.float32, -bound, bound)
        bias = jax.random.uniform(kb, (fan_out, 1), jnp.float32, -bound, bound)
        return w, bias

    keys = jax.random.split(key, 6)
    w_enc1, b_enc1 = linear(keys[0], input_dim + condition_dim, hidden_dim)
    w_mu, b_mu = linear(keys[1], hidden_dim, latent_dim)
    w_var, b_var = linear(keys[2], hidden_dim, latent_dim)
    w_dec1, b_dec1 = linear(keys[3], latent_dim + condition_dim, hidden_dim)
    w_dec2, b_dec2 = linear(keys[4], hidden_dim, hidden_dim)
    w_dec3, b_dec3 = linear(keys[5], hidden_dim, input_dim)

    w_dec1_z = w_dec1[:, :latent_dim]   # latent part of decoder.latent_to_hidden
    w_dec1_y = w_dec1[:, latent_dim:]   # condition part

    w_in = jnp.concatenate([w_enc1, w_dec1_y, w_dec1_z], axis=1)
    w_hid = jnp.concatenate([w_mu, w_var, w_dec2, w_dec3], axis=0)
    b = jnp.concatenate([b_enc1, b_mu, b_var, b_dec1, b_dec2, b_dec3], axis=0)
    return dict(w_in=w_in.astype(jnp.bfloat16),
                w_hid=w_hid.astype(jnp.bfloat16),
                b=b)


def _reference_forward(x, y, eps, p):
    """Pure-JAX reference mirroring the kernel's numerics (bf16 dot operands,
    f32 accumulation and elementwise math); returns batch-major outputs."""
    f32 = jnp.float32
    q = lambda a: a.astype(jnp.bfloat16).astype(f32)
    lrelu = lambda v: jnp.where(v >= 0, v, _LEAKY_SLOPE * v)
    mm = lambda a, c: jnp.dot(a, c, precision=jax.lax.Precision.HIGHEST,
                              preferred_element_type=f32)

    din, dc, dl = x.shape[1], y.shape[1], eps.shape[1]
    w_in = p["w_in"].astype(f32)
    w_hid = p["w_hid"].astype(f32)
    b = p["b"]
    h = w_in.shape[0]
    w_enc1 = w_in[:, :din + dc]
    w_dec1_y = w_in[:, din + dc:din + 2 * dc]
    w_dec1_z = w_in[:, din + 2 * dc:]
    w_muvar = w_hid[:2 * dl]
    w_dec2 = w_hid[2 * dl:2 * dl + h]
    w_dec3 = w_hid[2 * dl + h:]
    b_enc1 = b[:h]
    b_muvar = b[h:h + 2 * dl]
    b_dec1 = b[h + 2 * dl:2 * h + 2 * dl]
    b_dec2 = b[2 * h + 2 * dl:3 * h + 2 * dl]
    b_dec3 = b[3 * h + 2 * dl:]

    xy_t = q(jnp.concatenate([x, y], axis=1)).T
    y_t = q(y).T
    eps_t = q(eps).T

    hidden = lrelu(mm(w_enc1, xy_t) + b_enc1)
    muvar = lrelu(mm(w_muvar, q(hidden)) + b_muvar)
    z_mu, z_var = muvar[:dl], muvar[dl:]
    x_sample = eps_t * jnp.exp(z_var * 0.5) + z_mu
    h1 = lrelu(mm(w_dec1_z, q(x_sample)) + mm(w_dec1_y, y_t) + b_dec1)
    h2 = lrelu(mm(w_dec2, q(h1)) + b_dec2)
    gen = jax.nn.sigmoid(mm(w_dec3, q(h2)) + b_dec3)
    return gen.T, z_mu.T, z_var.T


if __name__ == "__main__":
    # Small CVAE config
    B = 8
    INPUT_DIM = 16
    HIDDEN_DIM = 32
    LATENT_DIM = 8
    COND_DIM = 4

    key = jax.random.PRNGKey(0)
    k_param, k_x, k_y, k_eps = jax.random.split(key, 4)

    params = init_params(k_param, INPUT_DIM, HIDDEN_DIM, LATENT_DIM, COND_DIM)
    x = jax.random.uniform(k_x, (B, INPUT_DIM), jnp.float32)
    y = jax.random.uniform(k_y, (B, COND_DIM), jnp.float32)
    # torch.randn_like(std): noise supplied deterministically from JAX PRNG.
    eps = jax.random.normal(k_eps, (B, LATENT_DIM), jnp.float32)

    gen, z_mu, z_var = cvae_forward(x, y, eps, params)
    jax.block_until_ready((gen, z_mu, z_var))
    assert gen.shape == (B, INPUT_DIM)
    assert z_mu.shape == (B, LATENT_DIM)
    assert z_var.shape == (B, LATENT_DIM)

    gen_r, mu_r, var_r = _reference_forward(x, y, eps, params)
    assert jnp.allclose(gen, gen_r, atol=1e-3, rtol=1e-3), "generated_sig mismatch"
    assert jnp.allclose(z_mu, mu_r, atol=1e-3, rtol=1e-3), "z_mu mismatch"
    assert jnp.allclose(z_var, var_r, atol=1e-3, rtol=1e-3), "z_var mismatch"

    # Multi-block grid + balanced lane padding: 3 blocks of 128 lanes, last
    # block partially padded.
    B2 = 300
    k2x, k2y, k2e = jax.random.split(jax.random.PRNGKey(1), 3)
    x2 = jax.random.uniform(k2x, (B2, INPUT_DIM), jnp.float32)
    y2 = jax.random.uniform(k2y, (B2, COND_DIM), jnp.float32)
    eps2 = jax.random.normal(k2e, (B2, LATENT_DIM), jnp.float32)
    gen2, mu2, var2 = cvae_forward(x2, y2, eps2, params, block_b=128)
    jax.block_until_ready((gen2, mu2, var2))
    gen2_r, mu2_r, var2_r = _reference_forward(x2, y2, eps2, params)
    assert jnp.allclose(gen2, gen2_r, atol=1e-3, rtol=1e-3), "tiled generated_sig mismatch"
    assert jnp.allclose(mu2, mu2_r, atol=1e-3, rtol=1e-3), "tiled z_mu mismatch"
    assert jnp.allclose(var2, var2_r, atol=1e-3, rtol=1e-3), "tiled z_var mismatch"

    # Forced 2-block split (v7x megacore path) at a larger batch.
    B3 = 1500
    k3x, k3y, k3e = jax.random.split(jax.random.PRNGKey(2), 3)
    x3 = jax.random.uniform(k3x, (B3, INPUT_DIM), jnp.float32)
    y3 = jax.random.uniform(k3y, (B3, COND_DIM), jnp.float32)
    eps3 = jax.random.normal(k3e, (B3, LATENT_DIM), jnp.float32)
    gen3, mu3, var3 = cvae_forward(x3, y3, eps3, params)
    jax.block_until_ready((gen3, mu3, var3))
    gen3_r, mu3_r, var3_r = _reference_forward(x3, y3, eps3, params)
    assert jnp.allclose(gen3, gen3_r, atol=1e-3, rtol=1e-3), "split generated_sig mismatch"
    assert jnp.allclose(mu3, mu3_r, atol=1e-3, rtol=1e-3), "split z_mu mismatch"
    assert jnp.allclose(var3, var3_r, atol=1e-3, rtol=1e-3), "split z_var mismatch"

    print("KERNEL_OK")
</pallas_src>

<mosaic_0001>
module attributes {stable_mosaic.version = 11 : i64} {
  func.func @_cvae_kernel(%arg0: i32, %arg1: memref<28x128xbf16, #tpu.memory_space<vmem>>, %arg2: memref<32x32xbf16, #tpu.memory_space<vmem>>, %arg3: memref<64x32xbf16, #tpu.memory_space<vmem>>, %arg4: memref<128x1xf32, #tpu.memory_space<vmem>>, %arg5: memref<32x128xf32, #tpu.memory_space<vmem>>) attributes {dimension_semantics = [#tpu.dimension_semantics<parallel>], iteration_bounds = array<i64: 1>, scalar_prefetch = 0 : i64, scratch_operands = 0 : i64, tpu.core_type = #tpu.core_type<tc>, window_params = [{transform_indices = @transform_0, window_bounds = array<i64: 28, 128>}, {pipeline_mode = #tpu.pipeline_mode<synchronous>, transform_indices = @transform_1, window_bounds = array<i64: 32, 32>}, {pipeline_mode = #tpu.pipeline_mode<synchronous>, transform_indices = @transform_2, window_bounds = array<i64: 64, 32>}, {pipeline_mode = #tpu.pipeline_mode<synchronous>, transform_indices = @transform_3, window_bounds = array<i64: 128, 1>}, {transform_indices = @transform_4, window_bounds = array<i64: 32, 128>}]} {
    %c0 = arith.constant 0 : index
    %c0_0 = arith.constant 0 : index
    %0 = vector.load %arg1[%c0, %c0_0] : memref<28x128xbf16, #tpu.memory_space<vmem>>, vector<20x128xbf16>
    %c16 = arith.constant 16 : index
    %c0_1 = arith.constant 0 : index
    %1 = vector.load %arg1[%c16, %c0_1] : memref<28x128xbf16, #tpu.memory_space<vmem>>, vector<4x128xbf16>
    %c20 = arith.constant 20 : index
    %c0_2 = arith.constant 0 : index
    %2 = vector.load %arg1[%c20, %c0_2] : memref<28x128xbf16, #tpu.memory_space<vmem>>, vector<8x128xbf16>
    %3 = arith.extf %2 : vector<8x128xbf16> to vector<8x128xf32>
    %c0_3 = arith.constant 0 : index
    %c0_4 = arith.constant 0 : index
    %4 = vector.load %arg2[%c0_3, %c0_4] : memref<32x32xbf16, #tpu.memory_space<vmem>>, vector<32x20xbf16>
    %c0_5 = arith.constant 0 : index
    %c20_6 = arith.constant 20 : index
    %5 = vector.load %arg2[%c0_5, %c20_6] : memref<32x32xbf16, #tpu.memory_space<vmem>>, vector<32x4xbf16>
    %c0_7 = arith.constant 0 : index
    %c24 = arith.constant 24 : index
    %6 = vector.load %arg2[%c0_7, %c24] : memref<32x32xbf16, #tpu.memory_space<vmem>>, vector<32x8xbf16>
    %c0_8 = arith.constant 0 : index
    %c0_9 = arith.constant 0 : index
    %7 = vector.load %arg3[%c0_8, %c0_9] : memref<64x32xbf16, #tpu.memory_space<vmem>>, vector<16x32xbf16>
    %c16_10 = arith.constant 16 : index
    %c0_11 = arith.constant 0 : index
    %8 = vector.load %arg3[%c16_10, %c0_11] : memref<64x32xbf16, #tpu.memory_space<vmem>>, vector<32x32xbf16>
    %c48 = arith.constant 48 : index
    %c0_12 = arith.constant 0 : index
    %9 = vector.load %arg3[%c48, %c0_12] : memref<64x32xbf16, #tpu.memory_space<vmem>>, vector<16x32xbf16>
    %c0_13 = arith.constant 0 : index
    %c0_14 = arith.constant 0 : index
    %10 = vector.load %arg4[%c0_13, %c0_14] : memref<128x1xf32, #tpu.memory_space<vmem>>, vector<32x1xf32>
    %c32 = arith.constant 32 : index
    %c0_15 = arith.constant 0 : index
    %11 = vector.load %arg4[%c32, %c0_15] : memref<128x1xf32, #tpu.memory_space<vmem>>, vector<16x1xf32>
    %c48_16 = arith.constant 48 : index
    %c0_17 = arith.constant 0 : index
    %12 = vector.load %arg4[%c48_16, %c0_17] : memref<128x1xf32, #tpu.memory_space<vmem>>, vector<32x1xf32>
    %c80 = arith.constant 80 : index
    %c0_18 = arith.constant 0 : index
    %13 = vector.load %arg4[%c80, %c0_18] : memref<128x1xf32, #tpu.memory_space<vmem>>, vector<32x1xf32>
    %c112 = arith.constant 112 : index
    %c0_19 = arith.constant 0 : index
    %14 = vector.load %arg4[%c112, %c0_19] : memref<128x1xf32, #tpu.memory_space<vmem>>, vector<16x1xf32>
    %cst = arith.constant dense<0.000000e+00> : vector<32x128xf32>
    %15 = tpu.matmul %4, %0, %cst {dimension_numbers = #tpu.dot_dimension_numbers<[1], [0], [0], [1], [0, 0, 1, 1], [], []>} : vector<32x20xbf16>, vector<20x128xbf16>, vector<32x128xf32> -> vector<32x128xf32>
    %16 = vector.broadcast %10 : vector<32x1xf32> to vector<32x128xf32>
    %17 = arith.addf %15, %16 : vector<32x128xf32>
    %cst_20 = arith.constant 0.000000e+00 : f32
    %18 = vector.broadcast %cst_20 : f32 to vector<32x128xf32>
    %19 = arith.cmpf oge, %17, %18 : vector<32x128xf32>
    %cst_21 = arith.constant 3.000000e-01 : f32
    %20 = vector.broadcast %cst_21 : f32 to vector<32x128xf32>
    %21 = arith.mulf %20, %17 : vector<32x128xf32>
    %22 = arith.select %19, %17, %21 : vector<32x128xi1>, vector<32x128xf32>
    %23 = arith.truncf %22 : vector<32x128xf32> to vector<32x128xbf16>
    %cst_22 = arith.constant dense<0.000000e+00> : vector<16x128xf32>
    %24 = tpu.matmul %7, %23, %cst_22 {dimension_numbers = #tpu.dot_dimension_numbers<[1], [0], [0], [1], [0, 0, 1, 1], [], []>} : vector<16x32xbf16>, vector<32x128xbf16>, vector<16x128xf32> -> vector<16x128xf32>
    %25 = vector.broadcast %11 : vector<16x1xf32> to vector<16x128xf32>
    %26 = arith.addf %24, %25 : vector<16x128xf32>
    %cst_23 = arith.constant 0.000000e+00 : f32
    %27 = vector.broadcast %cst_23 : f32 to vector<16x128xf32>
    %28 = arith.cmpf oge, %26, %27 : vector<16x128xf32>
    %cst_24 = arith.constant 3.000000e-01 : f32
    %29 = vector.broadcast %cst_24 : f32 to vector<16x128xf32>
    %30 = arith.mulf %29, %26 : vector<16x128xf32>
    %31 = arith.select %28, %26, %30 : vector<16x128xi1>, vector<16x128xf32>
    %32 = vector.extract_strided_slice %31 {offsets = [0, 0], sizes = [8, 128], strides = [1, 1]} : vector<16x128xf32> to vector<8x128xf32>
    %33 = vector.extract_strided_slice %31 {offsets = [8, 0], sizes = [8, 128], strides = [1, 1]} : vector<16x128xf32> to vector<8x128xf32>
    %cst_25 = arith.constant 5.000000e-01 : f32
    %34 = vector.broadcast %cst_25 : f32 to vector<8x128xf32>
    %35 = arith.mulf %33, %34 : vector<8x128xf32>
    %36 = math.exp %35 : vector<8x128xf32>
    %37 = arith.mulf %3, %36 : vector<8x128xf32>
    %38 = arith.addf %37, %32 : vector<8x128xf32>
    %39 = arith.truncf %38 : vector<8x128xf32> to vector<8x128xbf16>
    %cst_26 = arith.constant dense<0.000000e+00> : vector<32x128xf32>
    %40 = tpu.matmul %6, %39, %cst_26 {dimension_numbers = #tpu.dot_dimension_numbers<[1], [0], [0], [1], [0, 0, 1, 1], [], []>} : vector<32x8xbf16>, vector<8x128xbf16>, vector<32x128xf32> -> vector<32x128xf32>
    %cst_27 = arith.constant dense<0.000000e+00> : vector<32x128xf32>
    %41 = tpu.matmul %5, %1, %cst_27 {dimension_numbers = #tpu.dot_dimension_numbers<[1], [0], [0], [1], [0, 0, 1, 1], [], []>} : vector<32x4xbf16>, vector<4x128xbf16>, vector<32x128xf32> -> vector<32x128xf32>
    %42 = arith.addf %40, %41 : vector<32x128xf32>
    %43 = vector.broadcast %12 : vector<32x1xf32> to vector<32x128xf32>
    %44 = arith.addf %42, %43 : vector<32x128xf32>
    %cst_28 = arith.constant 0.000000e+00 : f32
    %45 = vector.broadcast %cst_28 : f32 to vector<32x128xf32>
    %46 = arith.cmpf oge, %44, %45 : vector<32x128xf32>
    %cst_29 = arith.constant 3.000000e-01 : f32
    %47 = vector.broadcast %cst_29 : f32 to vector<32x128xf32>
    %48 = arith.mulf %47, %44 : vector<32x128xf32>
    %49 = arith.select %46, %44, %48 : vector<32x128xi1>, vector<32x128xf32>
    %50 = arith.truncf %49 : vector<32x128xf32> to vector<32x128xbf16>
    %cst_30 = arith.constant dense<0.000000e+00> : vector<32x128xf32>
    %51 = tpu.matmul %8, %50, %cst_30 {dimension_numbers = #tpu.dot_dimension_numbers<[1], [0], [0], [1], [0, 0, 1, 1], [], []>} : vector<32x32xbf16>, vector<32x128xbf16>, vector<32x128xf32> -> vector<32x128xf32>
    %52 = vector.broadcast %13 : vector<32x1xf32> to vector<32x128xf32>
    %53 = arith.addf %51, %52 : vector<32x128xf32>
    %cst_31 = arith.constant 0.000000e+00 : f32
    %54 = vector.broadcast %cst_31 : f32 to vector<32x128xf32>
    %55 = arith.cmpf oge, %53, %54 : vector<32x128xf32>
    %cst_32 = arith.constant 3.000000e-01 : f32
    %56 = vector.broadcast %cst_32 : f32 to vector<32x128xf32>
    %57 = arith.mulf %56, %53 : vector<32x128xf32>
    %58 = arith.select %55, %53, %57 : vector<32x128xi1>, vector<32x128xf32>
    %59 = arith.truncf %58 : vector<32x128xf32> to vector<32x128xbf16>
    %cst_33 = arith.constant dense<0.000000e+00> : vector<16x128xf32>
    %60 = tpu.matmul %9, %59, %cst_33 {dimension_numbers = #tpu.dot_dimension_numbers<[1], [0], [0], [1], [0, 0, 1, 1], [], []>} : vector<16x32xbf16>, vector<32x128xbf16>, vector<16x128xf32> -> vector<16x128xf32>
    %61 = vector.broadcast %14 : vector<16x1xf32> to vector<16x128xf32>
    %62 = arith.addf %60, %61 : vector<16x128xf32>
    %63 = arith.negf %62 : vector<16x128xf32>
    %64 = math.exp %63 : vector<16x128xf32>
    %cst_34 = arith.constant 1.000000e+00 : f32
    %65 = vector.broadcast %cst_34 : f32 to vector<16x128xf32>
    %66 = arith.addf %65, %64 : vector<16x128xf32>
    %67 = arith.divf %65, %66 : vector<16x128xf32>
    %c0_35 = arith.constant 0 : index
    %c0_36 = arith.constant 0 : index
    %68 = vector.load %arg5[%c0_35, %c0_36] : memref<32x128xf32, #tpu.memory_space<vmem>>, vector<16x128xf32>
    tpu.vector_store %arg5[%c0_35, %c0_36], %67 {strides = array<i32>} : memref<32x128xf32, #tpu.memory_space<vmem>>, vector<16x128xf32>,
    %c16_37 = arith.constant 16 : index
    %c0_38 = arith.constant 0 : index
    %69 = vector.load %arg5[%c16_37, %c0_38] : memref<32x128xf32, #tpu.memory_space<vmem>>, vector<16x128xf32>
    tpu.vector_store %arg5[%c16_37, %c0_38], %31 {strides = array<i32>} : memref<32x128xf32, #tpu.memory_space<vmem>>, vector<16x128xf32>,
    return
  }
  func.func @transform_0(%arg0: i32) -> (i32, i32) {
    %c0_i32 = arith.constant 0 : i32
    %c0_i32_0 = arith.constant 0 : i32
    return %c0_i32, %arg0 : i32, i32
  }
  func.func @transform_1(%arg0: i32) -> (i32, i32) {
    %c0_i32 = arith.constant 0 : i32
    %c0_i32_0 = arith.constant 0 : i32
    %c0_i32_1 = arith.constant 0 : i32
    return %c0_i32, %c0_i32_0 : i32, i32
  }
  func.func @transform_2(%arg0: i32) -> (i32, i32) {
    %c0_i32 = arith.constant 0 : i32
    %c0_i32_0 = arith.constant 0 : i32
    %c0_i32_1 = arith.constant 0 : i32
    return %c0_i32, %c0_i32_0 : i32, i32
  }
  func.func @transform_3(%arg0: i32) -> (i32, i32) {
    %c0_i32 = arith.constant 0 : i32
    %c0_i32_0 = arith.constant 0 : i32
    %c0_i32_1 = arith.constant 0 : i32
    return %c0_i32, %c0_i32_0 : i32, i32
  }
  func.func @transform_4(%arg0: i32) -> (i32, i32) {
    %c0_i32 = arith.constant 0 : i32
    %c0_i32_0 = arith.constant 0 : i32
    return %c0_i32, %arg0 : i32, i32
  }
}

</mosaic_0001>

<bundles_post_ra>
// kernel: cvae_forward.1
= control target key start
LH: loop header
LB: loop body
LE: loop exit
PB: predicated region body
PF: predicated region fallthrough
CT: control target
= control target key end

     0   :  { %vm99_vm0 = vcmask 1041408   ;;  %v703_v1 = vmov 0   ;;  %vm92_vm1 = vcmask 162816   ;;  %s705_s9 = smov 104   ;;  %v706_v23 = vmov 0.0   ;;  %s849_s0 = inlined_call_operand.vmem [shape: bf16[28,128], index: 0, kind: input, shape index: {}]   ;;  %s850_s1 = inlined_call_operand.vmem [shape: bf16[32,32], index: 1, kind: input, shape index: {}]   ;;  %s851_s3 = inlined_call_operand.vmem [shape: f32[128,1], index: 3, kind: input, shape index: {}]   ;;  %s852_s2 = inlined_call_operand.vmem [shape: bf16[64,32], index: 2, kind: input, shape index: {}]   ;;  %s853_s4 = inlined_call_operand.vmem [shape: f32[32,128], index: 4, kind: output, shape index: {}]  }
   0x1   :  { %v736_v0 = vld [vmem:[%s849_s0 + $0x8] sm:$0x3]  ;;  %683 = vset.pattern.permute.xlu0 %v703_v1  ;;  %684 = vset.pattern.permute.xlu1 %v703_v1  ;;  %v686_v3 = vld [vmem:[%s849_s0] sm:$0xff]   ;;  %v39_v6 = vld [vmem:[%s851_s3 + $0x10] sm:$0xff]  ;;  %vm707_vm2 = vmmov 0   ;;  %vm181_vm7 = vcmask 261120  }
   0x2   :  { %v594_v2 = vcombine.low %v736_v0, %v736_v0  ;;  %v687_v4 = vld [vmem:[%s850_s1] sm:$0xff]   ;;  %65 = vperm.xlu0 %683, %v39_v6   ;;  %v40_v8 = vld [vmem:[%s851_s3 + $0x18] sm:$0xff]  ;;  %v688_v9 = vld [vmem:[%s850_s1 + $0x8] sm:$0xff]   ;;  %s704_s1 = smov 108   ;;  %639 = vmatprep.subr.bf16.mxu1 %v706_v23  ;;  %v258_v48 = vsel %vm99_vm0, %v736_v0, 0  ;;  %vm250_vm8 = vcmask 31744  }
   0x3   :  { %635 = vmatprep.mubr.msk.bf16.mxu0 %vm92_vm1, %v687_v4  ;;  %v37_v7 = vld [vmem:[%s851_s3] sm:$0xff]  ;;  %v38_v10 = vld [vmem:[%s851_s3 + $0x8] sm:$0xff]  ;;  %v43_v15 = vld [vmem:[%s851_s3 + $0x30] sm:$0xff]  ;;  %643 = vmatprep.mubr.msk.bf16.mxu1 %vm707_vm2, %v706_v23  ;;  %vm315_vm9 = vcmask 64512   ;;  %vm322_vm12 = vcmask 1043456  }
   0x4   :  { %675 = vmatprep.subr.msk.bf16.mxu0 %vm99_vm0, %v594_v2  ;;  %v101_v5 = vsel %vm99_vm0, %v594_v2, 0  ;;  %55 = vperm.xlu1 %684, %v37_v7   ;;  %v42_v11 = vld [vmem:[%s851_s3 + $0x28] sm:$0xff]  ;;  %v41_v12 = vld [vmem:[%s851_s3 + $0x20] sm:$0xff]  ;;  %v44_v16 = vld [vmem:[%s851_s3 + $0x38] sm:$0xff] }
   0x5   :  { %632 = vmatpush3.bf16.msra.mxu0 %v101_v5  ;;  %v45_v13 = vld [vmem:[%s851_s3 + $0x40] sm:$0xff]  ;;  %v46_v14 = vld [vmem:[%s851_s3 + $0x48] sm:$0xff]  ;;  %v47_v19 = vld [vmem:[%s851_s3 + $0x50] sm:$0xff] }
   0x6   :  { %633 = vmatprep.subr.bf16.mxu0 %v686_v3  ;;  %70 = vperm.xlu0 %683, %v40_v8   ;;  %v49_v17 = vld [vmem:[%s851_s3 + $0x60] sm:$0xff]  ;;  %v50_v18 = vld [vmem:[%s851_s3 + $0x68] sm:$0xff]  ;;  %v48_v20 = vld [vmem:[%s851_s3 + $0x58] sm:$0xff] }
   0x7   :  { %v51_v21 = vld [vmem:[%s851_s3 + $0x70] sm:$0xff]  ;;  %v52_v22 = vld [vmem:[%s851_s3 + $0x78] sm:$0xff]  ;;  %v689_v46 = vld [vmem:[%s852_s2] sm:$0xff]  }
   0x8   :  { %60 = vperm.xlu1 %684, %v38_v10   ;;  %v21_v1 = vld [vmem:[%s849_s0 + $0x8] sm:$0xc]  ;;  %v22_v2 = vld [vmem:[%s849_s0 + $0xc] sm:$0x3] }
   0x9   :  { %634 = vmatpush3.bf16.msra.mxu0 %v686_v3  ;;  %v23_v3 = vunpack.c.l.bf16 %v21_v1 }
   0xa   :  { %676 = vmatprep.subr.msk.bf16.mxu0 %vm99_vm0, %v736_v0  ;;  %173 = vperm.xlu0 %683, %v42_v11  }
   0xc   :  { %636 = vmatmul.mubr.msk.bf16.vlgmr.msra.gmra.mxu0 %vm92_vm1, %v688_v9  ;;  %168 = vperm.xlu1 %684, %v41_v12  }
   0xd   :  { %648 = vmatpush3.bf16.msra.mxu0 %v258_v48  ;;  %v691_v48 = vld [vmem:[%s852_s2 + $0x10] sm:$0xff]  }
   0xe   :  { %246 = vrot.lane.b32.xlu0 %v687_v4, %s704_s1 }
  0x10   :  { %309 = vrot.lane.b32.xlu1 %v687_v4, %s705_s9  ;;  %v24_v4 = vunpack.c.l.bf16 %v22_v2 }
  0x12   :  { %248 = vrot.lane.b32.xlu0 %v688_v9, %s704_s1 }
  0x14   :  { %311 = vrot.lane.b32.xlu1 %v688_v9, %s705_s9 }
  0x16   :  { %387 = vperm.xlu0 %683, %v45_v13  }
  0x18   :  { %392 = vperm.xlu1 %684, %v46_v14  }
  0x1a   :  { %377 = vperm.xlu0 %683, %v43_v15  }
  0x1c   :  { %382 = vperm.xlu1 %684, %v44_v16   ;;  %v690_v16 = vld [vmem:[%s852_s2 + $0x8] sm:$0xff]  }
  0x1e   :  { %425 = vperm.xlu0 %683, %v49_v17  }
  0x20   :  { %430 = vperm.xlu1 %684, %v50_v18  }
  0x22   :  { %415 = vperm.xlu0 %683, %v47_v19  }
  0x24   :  { %420 = vperm.xlu1 %684, %v48_v20  }
  0x26   :  { %514 = vperm.xlu0 %683, %v51_v21  }
  0x28   :  { %519 = vperm.xlu1 %684, %v52_v22  }
  0x7d   :  { %v66_v24 = vpop.permute.xlu0 %65 }
  0x7f   :  { %v56_v25 = vpop.permute.xlu1 %55 }
  0x81   :  { %v71_v29 = vpop.permute.xlu0 %70 }
  0x83   :  { %v61_v34 = vpop.permute.xlu1 %60 }
  0x85   :  { %v174_v47 = vpop.permute.xlu0 %173 }
  0x87   :  { %v169_v50 = vpop.permute.xlu1 %168 }
  0x89   :  { %v247_v49 = vpop.permute.xlu0 %246 }
  0x8a   :  { %649 = vmatprep.mubr.msk.bf16.mxu0 %vm250_vm8, %v247_v49 }
  0x8b   :  { %v310_v52 = vpop.permute.xlu1 %309 }
  0x8d   :  { %v249_v51 = vpop.permute.xlu0 %248 }
  0x8e   :  { %650 = vmatmul.mubr.msk.bf16.vlgmr.msra.gmra.mxu0 %vm250_vm8, %v249_v51 }
  0x8f   :  { %v312_v15 = vpop.permute.xlu1 %311  ;;  %663 = vmatprep.mubr.msk.bf16.mxu0 %vm181_vm7, %v690_v16 }
  0x91   :  { %v388_v18 = vpop.permute.xlu0 %387 }
  0x93   :  { %v393_v21 = vpop.permute.xlu1 %392 }
  0xcc   :  { %v637_v26 = vpop.f32.mrf.mxu0 }
  0xcd   :  { %v146_v27 = vadd.f32 %v637_v26, %v66_v24 }
  0xce   :  { %v137_v28 = vpop.f32.mrf.mxu0 }
  0xcf   :  { %v138_v30 = vadd.f32 %v137_v28, %v56_v25  ;;  %v158_v32 = vmul.f32 0.3, %v146_v27  ;;  %vm154_vm3 = vcmp.ge.f32.partialorder %v146_v27, 0.0  ;;  %v378_v28 = vpop.permute.xlu0 %377 }
  0xd0   :  { %v638_v31 = vpop.f32.mrf.mxu0 }
  0xd1   :  { %v149_v33 = vadd.f32 %v638_v31, %v71_v29  ;;  %v156_v38 = vmul.f32 0.3, %v138_v30  ;;  %v162_v40 = vsel %vm154_vm3, %v146_v27, %v158_v32  ;;  %vm152_vm6 = vcmp.ge.f32.partialorder %v138_v30, 0.0 }
  0xd2   :  { %v140_v35 = vpop.f32.mrf.mxu0 }
  0xd3   :  { %v159_v36 = vmul.f32 0.3, %v149_v33  ;;  %v141_v37 = vadd.f32 %v140_v35, %v61_v34  ;;  %vm155_vm4 = vcmp.ge.f32.partialorder %v149_v33, 0.0  ;;  %v160_v44 = vsel %vm152_vm6, %v138_v30, %v156_v38  ;;  %v426_v49 = vpop.permute.xlu0 %425 }
  0xd5   :  { %vm153_vm5 = vcmp.ge.f32.partialorder %v141_v37, 0.0  ;;  %v157_v39 = vmul.f32 0.3, %v141_v37  ;;  %v163_v41 = vsel %vm155_vm4, %v149_v33, %v159_v36 }
  0xd6   :  { %v165_v42 = vpack.c.bf16 %v163_v41, %v162_v40 }
  0xd7   :  { %v161_v43 = vsel %vm153_vm5, %v141_v37, %v157_v39  ;;  %v383_v37 = vpop.permute.xlu1 %382 }
  0xd8   :  { %640 = vmatpush3.bf16.msra.mxu1 %v165_v42  ;;  %v164_v45 = vpack.c.bf16 %v161_v43, %v160_v44 }
  0xd9   :  { %641 = vmatprep.subr.bf16.mxu1 %v706_v23 }
  0xdc   :  { %642 = vmatpush3.bf16.msra.mxu1 %v164_v45 }
  0xdf   :  { %644 = vmatmul.mubr.msk.bf16.vlgmr.msra.gmra.mxu1 %vm181_vm7, %v689_v46 }
  0xe0   :  { %655 = vmatprep.mubr.msk.bf16.mxu1 %vm315_vm9, %v310_v52 }
 0x14e   :  { %v651_v17 = vpop.f32.mrf.mxu0 }
 0x150   :  { %v294_v19 = vpop.f32.mrf.mxu0 }
 0x152   :  { %v652_v24 = vpop.f32.mrf.mxu0 }
 0x154   :  { %v297_v32 = vpop.f32.mrf.mxu0 }
 0x19f   :  { %v219_v53 = vpop.f32.mrf.mxu1 }
 0x1a0   :  { %v220_v54 = vadd.f32 %v219_v53, %v169_v50  ;;  %v431_v50 = vpop.permute.xlu1 %430 }
 0x1a1   :  { %v645_v55 = vpop.f32.mrf.mxu1 }
 0x1a2   :  { %vm226_vm10 = vcmp.ge.f32.partialorder %v220_v54, 0.0  ;;  %v228_v56 = vmul.f32 0.3, %v220_v54 }
 0x1a3   :  { %v222_v57 = vpop.f32.mrf.mxu1 }
 0x1a4   :  { %v230_v58 = vsel %vm226_vm10, %v220_v54, %v228_v56  ;;  %v223_v59 = vadd.f32 %v222_v57, %v174_v47  ;;  %v416_v54 = vpop.permute.xlu0 %415 }
 0x1a5   :  { %585 = vst [vmem:[%s853_s4 + $0x10] sm:$0xff] %v230_v58  ;;  %v646_v60 = vpop.f32.mrf.mxu1  ;;  %v241_v7 = vrot.slane %v230_v58, 4 }
 0x1a6   :  { %vm227_vm11 = vcmp.ge.f32.partialorder %v223_v59, 0.0  ;;  %v229_v61 = vmul.f32 0.3, %v223_v59 }
 0x1a8   :  { %v231_v62 = vsel %vm227_vm11, %v223_v59, %v229_v61  ;;  %v421_v59 = vpop.permute.xlu1 %420 }
 0x1a9   :  { %v232_v63 = vmul.f32 0.5, %v231_v62  ;;  %586 = vst [vmem:[%s853_s4 + $0x18] sm:$0xff] %v231_v62 }
 0x1ab   :  { %v233_v0 = vmul.f32 1.442695, %v232_v63 }
 0x1ad   :  { %693 = vpow2.f32 %v233_v0 }
 0x1ba   :  { %v694_v5 = vpop.eup %693 }
 0x1bb   :  { %v236_v6 = vrot.slane %v694_v5, 4 }
 0x1bd   :  { %v238_v8 = vmul.f32 %v236_v6, %v23_v3  ;;  %v239_v9 = vmul.f32 %v236_v6, %v24_v4 }
 0x1bf   :  { %v243_v10 = vadd.f32 %v241_v7, %v238_v8  ;;  %v244_v11 = vadd.f32 %v241_v7, %v239_v9  ;;  %v692_v7 = vld [vmem:[%s852_s2 + $0x18] sm:$0xff]   ;;  %v515_v8 = vpop.permute.xlu0 %514 }
 0x1c1   :  { %v245_v12 = vpack.c.bf16 %v244_v11, %v243_v10 }
 0x1c3   :  { %v314_v13 = vrot.slane %v245_v12, 2 }
 0x1c5   :  { %677 = vmatprep.subr.msk.bf16.mxu1 %vm322_vm12, %v314_v13  ;;  %v324_v14 = vsel %vm322_vm12, %v314_v13, 0  ;;  %v520_v13 = vpop.permute.xlu1 %519 }
 0x1c6   :  { %654 = vmatpush3.bf16.msra.mxu1 %v324_v14 }
 0x1c7   :  { %667 = vmatprep.subr.bf16.mxu1 %v706_v23 }
 0x1c9   :  { %656 = vmatmul.mubr.msk.bf16.vlgmr.msra.gmra.mxu1 %vm315_vm9, %v312_v15 }
 0x1ca   :  { %671 = vmatprep.mubr.msk.bf16.mxu1 %vm707_vm2, %v706_v23 }
 0x289   :  { %v657_v20 = vpop.f32.mrf.mxu1 }
 0x28a   :  { %v369_v22 = vadd.f32 %v657_v20, %v651_v17 }
 0x28b   :  { %v360_v25 = vpop.f32.mrf.mxu1 }
 0x28c   :  { %v397_v26 = vadd.f32 %v388_v18, %v369_v22  ;;  %v361_v27 = vadd.f32 %v360_v25, %v294_v19 }
 0x28d   :  { %v658_v29 = vpop.f32.mrf.mxu1 }
 0x28e   :  { %v395_v30 = vadd.f32 %v378_v28, %v361_v27  ;;  %v372_v31 = vadd.f32 %v658_v29, %v652_v24  ;;  %v405_v34 = vmul.f32 0.3, %v397_v26  ;;  %vm401_vm13 = vcmp.ge.f32.partialorder %v397_v26, 0.0 }
 0x28f   :  { %v363_v33 = vpop.f32.mrf.mxu1 }
 0x290   :  { %v398_v35 = vadd.f32 %v393_v21, %v372_v31  ;;  %v364_v36 = vadd.f32 %v363_v33, %v297_v32  ;;  %v403_v38 = vmul.f32 0.3, %v395_v30  ;;  %vm399_vm15 = vcmp.ge.f32.partialorder %v395_v30, 0.0 }
 0x291   :  { %v409_v42 = vsel %vm401_vm13, %v397_v26, %v405_v34 }
 0x292   :  { %vm402_vm14 = vcmp.ge.f32.partialorder %v398_v35, 0.0  ;;  %v406_v39 = vmul.f32 0.3, %v398_v35  ;;  %v396_v40 = vadd.f32 %v383_v37, %v364_v36  ;;  %v407_v45 = vsel %vm399_vm15, %v395_v30, %v403_v38 }
 0x294   :  { %vm400_vm0 = vcmp.ge.f32.partialorder %v396_v40, 0.0  ;;  %v404_v41 = vmul.f32 0.3, %v396_v40  ;;  %v410_v43 = vsel %vm402_vm14, %v398_v35, %v406_v39 }
 0x295   :  { %v412_v44 = vpack.c.bf16 %v410_v43, %v409_v42 }
 0x296   :  { %v408_v46 = vsel %vm400_vm0, %v396_v40, %v404_v41 }
 0x297   :  { %659 = vmatprep.subr.bf16.mxu0 %v412_v44  ;;  %v411_v47 = vpack.c.bf16 %v408_v46, %v407_v45 }
 0x298   :  { %660 = vmatpush3.bf16.msra.mxu0 %v412_v44 }
 0x299   :  { %661 = vmatprep.subr.bf16.mxu0 %v411_v47 }
 0x29c   :  { %662 = vmatpush3.bf16.msra.mxu0 %v411_v47 }
 0x29f   :  { %664 = vmatmul.mubr.msk.bf16.vlgmr.msra.gmra.mxu0 %vm181_vm7, %v691_v48 }
 0x35f   :  { %v665_v51 = vpop.f32.mrf.mxu0 }
 0x360   :  { %v492_v52 = vadd.f32 %v665_v51, %v426_v49 }
 0x361   :  { %v483_v53 = vpop.f32.mrf.mxu0 }
 0x362   :  { %v504_v55 = vmul.f32 0.3, %v492_v52  ;;  %vm500_vm1 = vcmp.ge.f32.partialorder %v492_v52, 0.0  ;;  %v484_v57 = vadd.f32 %v483_v53, %v416_v54 }
 0x363   :  { %v666_v56 = vpop.f32.mrf.mxu0 }
 0x364   :  { %v495_v58 = vadd.f32 %v666_v56, %v431_v50  ;;  %v508_v63 = vsel %vm500_vm1, %v492_v52, %v504_v55  ;;  %v502_v0 = vmul.f32 0.3, %v484_v57  ;;  %vm498_vm4 = vcmp.ge.f32.partialorder %v484_v57, 0.0 }
 0x365   :  { %v486_v60 = vpop.f32.mrf.mxu0 }
 0x366   :  { %vm501_vm2 = vcmp.ge.f32.partialorder %v495_v58, 0.0  ;;  %v505_v61 = vmul.f32 0.3, %v495_v58  ;;  %v487_v62 = vadd.f32 %v486_v60, %v421_v59  ;;  %v506_v5 = vsel %vm498_vm4, %v484_v57, %v502_v0 }
 0x368   :  { %v509_v1 = vsel %vm501_vm2, %v495_v58, %v505_v61  ;;  %vm499_vm3 = vcmp.ge.f32.partialorder %v487_v62, 0.0  ;;  %v503_v2 = vmul.f32 0.3, %v487_v62 }
 0x369   :  { %v511_v3 = vpack.c.bf16 %v509_v1, %v508_v63 }
 0x36a   :  { %v507_v4 = vsel %vm499_vm3, %v487_v62, %v503_v2 }
 0x36b   :  { %668 = vmatpush3.bf16.msra.mxu1 %v511_v3  ;;  %v510_v6 = vpack.c.bf16 %v507_v4, %v506_v5 }
 0x36c   :  { %669 = vmatprep.subr.bf16.mxu1 %v706_v23 }
 0x36f   :  { %670 = vmatpush3.bf16.msra.mxu1 %v510_v6 }
 0x372   :  { %672 = vmatmul.mubr.msk.bf16.vlgmr.msra.gmra.mxu1 %vm181_vm7, %v692_v7 }
 0x432   :  { %v564_v9 = vpop.f32.mrf.mxu1 }
 0x433   :  { %v565_v10 = vadd.f32 %v564_v9, %v515_v8 }
 0x434   :  { %v673_v11 = vpop.f32.mrf.mxu1 }
 0x435   :  { %v609_v12 = vmul.f32 -1.442695, %v565_v10 }
 0x436   :  { %v567_v14 = vpop.f32.mrf.mxu1 }
 0x437   :  { %695 = vpow2.f32 %v609_v12  ;;  %v568_v15 = vadd.f32 %v567_v14, %v520_v13 }
 0x438   :  { %v674_v16 = vpop.f32.mrf.mxu1 }
 0x439   :  { %v610_v17 = vmul.f32 -1.442695, %v568_v15 }
 0x43b   :  { %697 = vpow2.f32 %v610_v17 }
 0x444   :  { %v696_v23 = vpop.eup %695 }
 0x445   :  { %v577_v18 = vadd.f32 1.0, %v696_v23 }
 0x447   :  { %699 = vrcp.f32 %v577_v18 }
 0x448   :  { %v698_v19 = vpop.eup %697 }
 0x449   :  { %v578_v20 = vadd.f32 1.0, %v698_v19 }
 0x44b   :  { %701 = vrcp.f32 %v578_v20 }
 0x454   :  { %v700_v21 = vpop.eup %699 }
 0x455   :  { %583 = vst [vmem:[%s853_s4] sm:$0xff] %v700_v21 }
 0x458   :  { %v702_v22 = vpop.eup %701 }
 0x459   :  { %584 = vst [vmem:[%s853_s4 + $0x8] sm:$0xff] %v702_v22 }

</bundles_post_ra>
